<compile_context>
chip_gen: v7x
topology: tpu7x:2x2x1
jax: 0.10.0
libtpu: 0.0.40
codegen_flags: <defaults>
</compile_context>

<pallas_src>
import jax
import jax.numpy as jnp
from jax.experimental import pallas as pl
from jax.experimental.pallas import tpu as pltpu

_BN_EPS = 1e-5
_VMEM_LIMIT_BYTES = 32 * 1024 * 1024   # safe on v5e/v6e (128 MiB) and v7x (64 MiB)
_TILE_R_CAP = 256                      # rows  (sublane axis), multiple of 8
_TILE_HW_CAP = 2048                    # lanes (spatial axis), multiple of 128
# max apply-pass VMEM: 2 bufs * (in + out) * 256*2048*4B ≈ 8 MiB  → fits everywhere


def _pick_tile(dim, align, cap):
    """Largest multiple of `align` that divides `dim` exactly and is <= cap.
    Falls back to the full extent (always a legal block size) otherwise."""
    if dim % align != 0 or dim <= align:
        return dim
    best = align
    t = align
    limit = min(dim, cap)
    while t <= limit:
        if dim % t == 0:
            best = t
        t += align
    return best


# ---------- pass 1: per-row (= per (n, c) pair) sum and sum-of-squares ----------

def _stats_kernel(x_ref, sum_ref, sumsq_ref):
    # grid = (R tiles [parallel], HW tiles [arbitrary/reduction, last])
    @pl.when(pl.program_id(1) == 0)
    def _init():
        sum_ref[...] = jnp.zeros_like(sum_ref)
        sumsq_ref[...] = jnp.zeros_like(sumsq_ref)

    x = x_ref[...].astype(jnp.float32)                     # (TILE_R, TILE_HW)
    # f32 accumulation; variance is finalized in the wrapper with a var>=0 clamp.
    sum_ref[...] += jnp.sum(x, axis=1, keepdims=True)      # (TILE_R, 1)
    sumsq_ref[...] += jnp.sum(x * x, axis=1, keepdims=True)


# ---------- pass 2: out = sigmoid(x * scale_c + bias_c) * x ---------------------

def _apply_kernel(x_ref, scale_ref, bias_ref, o_ref):
    x = x_ref[...]                                         # (TILE_R, TILE_HW)
    a = scale_ref[...]                                     # (TILE_R, 1)
    b = bias_ref[...]                                      # (TILE_R, 1)
    o_ref[...] = (jax.nn.sigmoid(x * a + b) * x).astype(o_ref.dtype)


def channel_att(x_nchw, gamma, beta):
    """x_nchw: (N, C, H, W) float32.  gamma/beta: (C,) float32.  Returns (N, C, H, W)."""
    N, C, H, W = x_nchw.shape
    HW = H * W
    R = N * C

    # Free, contiguous reshape: channel-major rows, spatial on lanes.
    x2d = x_nchw.reshape(R, HW)

    tile_r = _pick_tile(R, 8, _TILE_R_CAP)
    tile_hw = _pick_tile(HW, 128, _TILE_HW_CAP)
    grid_r = R // tile_r
    grid_hw = HW // tile_hw

    # ---- pass 1: streamed per-row statistics ----
    row_sum, row_sumsq = pl.pallas_call(
        _stats_kernel,
        out_shape=(
            jax.ShapeDtypeStruct((R, 1), jnp.float32),
            jax.ShapeDtypeStruct((R, 1), jnp.float32),
        ),
        grid=(grid_r, grid_hw),
        in_specs=[pl.BlockSpec((tile_r, tile_hw), lambda i, j: (i, j))],
        out_specs=(
            pl.BlockSpec((tile_r, 1), lambda i, j: (i, 0)),
            pl.BlockSpec((tile_r, 1), lambda i, j: (i, 0)),
        ),
        compiler_params=pltpu.CompilerParams(
            dimension_semantics=("parallel", "arbitrary"),
            vmem_limit_bytes=_VMEM_LIMIT_BYTES,
        ),
    )(x2d)

    # ---- fold the tiny per-channel math in the wrapper (C elements, negligible) ----
    count = jnp.float32(N * HW)
    ch_sum = row_sum.reshape(N, C).sum(axis=0)                     # (C,)
    ch_sumsq = row_sumsq.reshape(N, C).sum(axis=0)                 # (C,)
    mean = ch_sum / count
    var = jnp.maximum(ch_sumsq / count - mean * mean, 0.0)         # biased, clamped >= 0
    inv_std = jax.lax.rsqrt(var + _BN_EPS)

    abs_g = jnp.abs(gamma)
    w_bn = abs_g / jnp.sum(abs_g)                                  # |gamma| / sum|gamma|

    # sigmoid( ((x - mean)*inv_std*gamma + beta) * w_bn ) * x
    #   == sigmoid( x * scale_c + bias_c ) * x
    scale_c = (gamma * inv_std * w_bn).astype(x2d.dtype)           # (C,)
    bias_c = ((beta - mean * gamma * inv_std) * w_bn).astype(x2d.dtype)

    scale_rows = jnp.tile(scale_c, N).reshape(R, 1)                # row r=(n*C+c) -> channel c
    bias_rows = jnp.tile(bias_c, N).reshape(R, 1)

    # ---- pass 2: streamed, lane-dense apply ----
    out2d = pl.pallas_call(
        _apply_kernel,
        out_shape=jax.ShapeDtypeStruct((R, HW), x2d.dtype),
        grid=(grid_r, grid_hw),
        in_specs=[
            pl.BlockSpec((tile_r, tile_hw), lambda i, j: (i, j)),
            pl.BlockSpec((tile_r, 1), lambda i, j: (i, 0)),
            pl.BlockSpec((tile_r, 1), lambda i, j: (i, 0)),
        ],
        out_specs=pl.BlockSpec((tile_r, tile_hw), lambda i, j: (i, j)),
        compiler_params=pltpu.CompilerParams(
            dimension_semantics=("parallel", "parallel"),
            vmem_limit_bytes=_VMEM_LIMIT_BYTES,
        ),
    )(x2d, scale_rows, bias_rows)

    return out2d.reshape(N, C, H, W)


def _reference(x_nchw, gamma, beta):
    """Pure-JAX reference of the PyTorch forward (training-mode BN)."""
    mean = jnp.mean(x_nchw, axis=(0, 2, 3), keepdims=True)
    var = jnp.mean((x_nchw - mean) ** 2, axis=(0, 2, 3), keepdims=True)
    x_hat = (x_nchw - mean) / jnp.sqrt(var + _BN_EPS)
    bn = x_hat * gamma[None, :, None, None] + beta[None, :, None, None]
    w_bn = jnp.abs(gamma) / jnp.sum(jnp.abs(gamma))
    y = bn * w_bn[None, :, None, None]
    return jax.nn.sigmoid(y) * x_nchw


if __name__ == "__main__":
    key = jax.random.PRNGKey(0)
    kx, kg, kb = jax.random.split(key, 3)

    N, C, H, W = 2, 4, 16, 16
    x = jax.random.normal(kx, (N, C, H, W), dtype=jnp.float32)
    # Deterministic synthetic BN parameters (PyTorch default would be gamma=1, beta=0;
    # random values make weight_bn non-trivial).
    gamma = jax.random.normal(kg, (C,), dtype=jnp.float32) * 0.5 + 1.0
    beta = jax.random.normal(kb, (C,), dtype=jnp.float32) * 0.1

    out = channel_att(x, gamma, beta)
    out = jax.block_until_ready(out)

    ref = _reference(x, gamma, beta)
    assert out.shape == (N, C, H, W)
    assert jnp.allclose(out, ref, atol=5e-5, rtol=5e-5), (
        f"max abs err {jnp.max(jnp.abs(out - ref))}"
    )

    print("KERNEL_OK")
</pallas_src>

<mosaic_0001>
module attributes {stable_mosaic.version = 11 : i64} {
  func.func @_stats_kernel(%arg0: i32, %arg1: i32, %arg2: memref<8x256xf32, #tpu.memory_space<vmem>>, %arg3: memref<8x1xf32, #tpu.memory_space<vmem>>, %arg4: memref<8x1xf32, #tpu.memory_space<vmem>>) attributes {dimension_semantics = [#tpu.dimension_semantics<parallel>, #tpu.dimension_semantics<arbitrary>], iteration_bounds = array<i64: 1, 1>, scalar_prefetch = 0 : i64, scratch_operands = 0 : i64, tpu.core_type = #tpu.core_type<tc>, window_params = [{transform_indices = @transform_0, window_bounds = array<i64: 8, 256>}, {transform_indices = @transform_1, window_bounds = array<i64: 8, 1>}, {transform_indices = @transform_2, window_bounds = array<i64: 8, 1>}]} {
    %c0_i32 = arith.constant 0 : i32
    %0 = arith.cmpi eq, %arg1, %c0_i32 : i32
    %1 = arith.extui %0 : i1 to i32
    %c0_i32_0 = arith.constant 0 : i32
    %2 = arith.cmpi ne, %1, %c0_i32_0 : i32
    scf.if %2 {
      %cst_11 = arith.constant 0.000000e+00 : f32
      %15 = vector.broadcast %cst_11 : f32 to vector<8x1xf32>
      %c0_12 = arith.constant 0 : index
      %c0_13 = arith.constant 0 : index
      %16 = vector.load %arg3[%c0_12, %c0_13] : memref<8x1xf32, #tpu.memory_space<vmem>>, vector<8x1xf32>
      tpu.vector_store %arg3[%c0_12, %c0_13], %15 {strides = array<i32>} : memref<8x1xf32, #tpu.memory_space<vmem>>, vector<8x1xf32>,
      %cst_14 = arith.constant 0.000000e+00 : f32
      %17 = vector.broadcast %cst_14 : f32 to vector<8x1xf32>
      %c0_15 = arith.constant 0 : index
      %c0_16 = arith.constant 0 : index
      %18 = vector.load %arg4[%c0_15, %c0_16] : memref<8x1xf32, #tpu.memory_space<vmem>>, vector<8x1xf32>
      tpu.vector_store %arg4[%c0_15, %c0_16], %17 {strides = array<i32>} : memref<8x1xf32, #tpu.memory_space<vmem>>, vector<8x1xf32>,
    } else {
    }
    %c0 = arith.constant 0 : index
    %c0_1 = arith.constant 0 : index
    %3 = vector.load %arg2[%c0, %c0_1] : memref<8x256xf32, #tpu.memory_space<vmem>>, vector<8x256xf32>
    %c0_2 = arith.constant 0 : index
    %c0_3 = arith.constant 0 : index
    %4 = vector.load %arg3[%c0_2, %c0_3] : memref<8x1xf32, #tpu.memory_space<vmem>>, vector<8x1xf32>
    %cst = arith.constant dense<0.000000e+00> : vector<8xf32>
    %5 = vector.multi_reduction <add>, %3, %cst [1] : vector<8x256xf32> to vector<8xf32>
    %6 = vector.shape_cast %5 : vector<8xf32> to vector<8x1xf32>
    %7 = arith.addf %4, %6 : vector<8x1xf32>
    %c0_4 = arith.constant 0 : index
    %c0_5 = arith.constant 0 : index
    %8 = vector.load %arg3[%c0_4, %c0_5] : memref<8x1xf32, #tpu.memory_space<vmem>>, vector<8x1xf32>
    tpu.vector_store %arg3[%c0_4, %c0_5], %7 {strides = array<i32>} : memref<8x1xf32, #tpu.memory_space<vmem>>, vector<8x1xf32>,
    %c0_6 = arith.constant 0 : index
    %c0_7 = arith.constant 0 : index
    %9 = vector.load %arg4[%c0_6, %c0_7] : memref<8x1xf32, #tpu.memory_space<vmem>>, vector<8x1xf32>
    %10 = arith.mulf %3, %3 : vector<8x256xf32>
    %cst_8 = arith.constant dense<0.000000e+00> : vector<8xf32>
    %11 = vector.multi_reduction <add>, %10, %cst_8 [1] : vector<8x256xf32> to vector<8xf32>
    %12 = vector.shape_cast %11 : vector<8xf32> to vector<8x1xf32>
    %13 = arith.addf %9, %12 : vector<8x1xf32>
    %c0_9 = arith.constant 0 : index
    %c0_10 = arith.constant 0 : index
    %14 = vector.load %arg4[%c0_9, %c0_10] : memref<8x1xf32, #tpu.memory_space<vmem>>, vector<8x1xf32>
    tpu.vector_store %arg4[%c0_9, %c0_10], %13 {strides = array<i32>} : memref<8x1xf32, #tpu.memory_space<vmem>>, vector<8x1xf32>,
    return
  }
  func.func @transform_0(%arg0: i32, %arg1: i32) -> (i32, i32) {
    %c0_i32 = arith.constant 0 : i32
    return %arg0, %arg1 : i32, i32
  }
  func.func @transform_1(%arg0: i32, %arg1: i32) -> (i32, i32) {
    %c0_i32 = arith.constant 0 : i32
    %c0_i32_0 = arith.constant 0 : i32
    return %arg0, %c0_i32 : i32, i32
  }
  func.func @transform_2(%arg0: i32, %arg1: i32) -> (i32, i32) {
    %c0_i32 = arith.constant 0 : i32
    %c0_i32_0 = arith.constant 0 : i32
    return %arg0, %c0_i32 : i32, i32
  }
}

</mosaic_0001>

<bundles_post_ra>
// kernel: tpu_custom_call.1
= control target key start
LH: loop header
LB: loop body
LE: loop exit
PB: predicated region body
PF: predicated region fallthrough
CT: control target
= control target key end

     0   :  { %8 = vsyncpa [#allocation3], 0  ;;  %s81_s9 = smov [#allocation2]   ;;  %s132_s0 = inlined_call_operand.hbm [shape: f32[8,256], index: 0, kind: input, shape index: {}]   ;;  %s133_s1 = inlined_call_operand.vmem [shape: f32[8,1], index: 1, kind: output, shape index: {0}]   ;;  %s134_s2 = inlined_call_operand.vmem [shape: f32[8,1], index: 2, kind: output, shape index: {1}]  }
   0x1   :  { %s15_s10 = sshll.u32 %s81_s9, 4  ;;  %s57_s13 = scalar_lea.hbm %s132_s0, 256  ;;  %s16_s10 = int_to_ptr.vmem [resolvable:$true] %s15_s10 }
   0x2   :  { %p58_p0 = scmp.ne.s32.totalorder %s132_s0, %s57_s13  ;;  %p61_p1 = scmp.lt.u32.totalorder %s57_s13, %s132_s0 }
   0x4   :  { %p63_p2 = pnand %p61_p1, %p58_p0 }
   0x6   :  { %66 = shalt.err (!%p63_p2)
}
   0x7   :  { %s67_s18 = scalar_lea.vmem %s16_s10, 256  ;;  %p72_p4 = scmp.lt.s32.totalorder %s16_s10, %s16_s10 }
   0x8   :  { %p68_p3 = scmp.ne.s32.totalorder %s16_s10, %s67_s18  ;;  %p73_p5 = scmp.lt.s32.totalorder %s67_s18, %s67_s18 }
   0xa   :  { %p74_p6 = por %p73_p5, %p72_p4 }
   0xc   :  { %p75_p7 = pnand %p74_p6, %p68_p3 }
   0xe   :  { %78 = shalt.err (!%p75_p7)
}
   0xf   :  { %18 = dma.hbm_to_vmem [thread:$0]  %s132_s0, 256, %s16_s10, [#allocation3]  }
  0x10   :  { %79 = dma.done.wait [#allocation3], 256  }
  0x11   :  { %80 = vsyncadd [#allocation3], 4294967040  ;;  %vm26_vm0 = vcmask 7168   ;;  %v82_v0 = vmov 0.0   ;;  %v29_v1 = vld [vmem:[#allocation2] sm:$0xff]  ;;  %v30_v2 = vld [vmem:[#allocation2 + $0x8] sm:$0xff] }
  0x12   :  { %27 = vst.msk [vmem:[%s133_s1] sm:$0xff] %vm26_vm0, %v82_v0  ;;  %28 = vst.msk [vmem:[%s134_s2] sm:$0xff] %vm26_vm0, %v82_v0  ;;  %v32_v3 = vadd.f32 %v30_v2, %v29_v1  ;;  %v39_v4 = vmul.f32 %v29_v1, %v29_v1  ;;  %v40_v5 = vmul.f32 %v30_v2, %v30_v2 }
  0x14   :  { %33 = vadd.xlane.f32.xlu0 %v32_v3  ;;  %v41_v6 = vadd.f32 %v40_v5, %v39_v4 }
  0x18   :  { %42 = vadd.xlane.f32.xlu0 %v41_v6 }
  0x19   :  { %v31_v7 = vld [vmem:[%s133_s1] sm:$0xff] }
  0x1a   :  { %v38_v10 = vld [vmem:[%s134_s2] sm:$0xff] }
  0xa1   :  { %v34_v8 = vpop.xlane.xlu0 %33 }
  0xa2   :  { %v35_v9 = vadd.f32 %v34_v8, %v31_v7 }
  0xa4   :  { %37 = vst.msk [vmem:[%s133_s1] sm:$0xff] %vm26_vm0, %v35_v9 }
  0xa5   :  { %v43_v11 = vpop.xlane.xlu0 %42 }
  0xa6   :  { %v44_v12 = vadd.f32 %v43_v11, %v38_v10 }
  0xa8   :  { %45 = vst.msk [vmem:[%s134_s2] sm:$0xff] %vm26_vm0, %v44_v12 }
  0xa9   :  { %54 = vsyncpa [#allocation3], 1 }

</bundles_post_ra>
